<compile_context>
chip_gen: v6e
topology: v6e:2x2x1
jax: 0.10.0
libtpu: 0.0.40
codegen_flags: <defaults>
</compile_context>

<pallas_src>
import functools
import math

import jax
import jax.numpy as jnp
from jax.experimental import pallas as pl
from jax.experimental.pallas import tpu as pltpu

LANE = 128      # TPU lane width (last dim)
SUBLANE = 16    # bf16 sublane pack (second-to-last dim)


def _round_up(v, m):
    return (v + m - 1) // m * m


def inference_kernel(x_ref, w1_ref, b1_ref, w2_ref, b2_ref, w3_ref, b3_ref, o_ref):
    x = x_ref[...]  # (tile, 128) bf16, 4 logical rows packed per physical row

    # Linear1 (bf16 x bf16 -> f32 acc) + bias (f32) + Tanh (f32 EUP, v5e-safe)
    h = jnp.dot(x, w1_ref[...], preferred_element_type=jnp.float32) + b1_ref[...]
    # Tanh after Linear1 AND Tanh at the head of the Sequential (per the spec)
    h = jnp.tanh(jnp.tanh(h))
    # Dropout(0.2): identity at inference  # TODO(synk): training-mode dropout not implemented

    # Linear2 + Tanh
    h = h.astype(w2_ref.dtype)
    h = jnp.dot(h, w2_ref[...], preferred_element_type=jnp.float32) + b2_ref[...]
    h = jnp.tanh(h)

    # Linear3 (logits, f32) -- block W3 maps each 32-lane group to its 8-lane logits slot
    h = h.astype(w3_ref.dtype)
    logits = jnp.dot(h, w3_ref[...], preferred_element_type=jnp.float32) + b3_ref[...]
    o_ref[...] = logits.astype(o_ref.dtype)


def init_params(key, d_in, hidden, d_out):
    """nn.Linear-style U(-1/sqrt(fan_in), +1/sqrt(fan_in)); weights stored (in, out)."""
    k1, k2, k3, k4, k5, k6 = jax.random.split(key, 6)

    def lin(kw, kb, fan_in, fan_out):
        bound = 1.0 / math.sqrt(fan_in)
        w = jax.random.uniform(kw, (fan_in, fan_out), jnp.float32, -bound, bound)
        b = jax.random.uniform(kb, (1, fan_out), jnp.float32, -bound, bound)
        return w, b

    w1, b1 = lin(k1, k2, d_in, hidden)
    w2, b2 = lin(k3, k4, hidden, hidden)
    w3, b3 = lin(k5, k6, hidden, d_out)
    return dict(w1=w1, b1=b1, w2=w2, b2=b2, w3=w3, b3=b3)


def prepare_params(params):
    """One-time: build block-diagonal packed weights (bf16) and tiled biases (f32).

    `pack` logical rows share one 128-lane physical row; each logical row owns a
    `group`-lane slot.  Zero blocks off the diagonal contribute exact zeros to
    the f32 accumulation, so packing is numerically transparent.
    """
    w1, b1 = params["w1"], params["b1"]
    w2, b2 = params["w2"], params["b2"]
    w3, b3 = params["w3"], params["b3"]
    d_in, hidden = w1.shape
    d_out = w3.shape[1]

    group = max(d_in, hidden)
    if LANE % group == 0:
        pack = LANE // group          # e.g. 128 // 32 = 4
    else:
        group = _round_up(group, LANE)
        pack = 1                      # fall back to plain lane padding

    def bd_weight(w, out_cols_per_group):
        r, c = w.shape
        m = jnp.zeros((pack * group, pack * out_cols_per_group), jnp.bfloat16)
        wb = w.astype(jnp.bfloat16)
        for g in range(pack):
            m = m.at[g * group:g * group + r,
                     g * out_cols_per_group:g * out_cols_per_group + c].set(wb)
        return m

    def tile_bias(b, cols_per_group):
        v = jnp.zeros((1, pack * cols_per_group), jnp.float32)
        bf = b.astype(jnp.float32)
        for g in range(pack):
            v = v.at[:, g * cols_per_group:g * cols_per_group + b.shape[1]].set(bf)
        return v

    return dict(
        w1=bd_weight(w1, group), b1=tile_bias(b1, group),
        w2=bd_weight(w2, group), b2=tile_bias(b2, group),
        w3=bd_weight(w3, d_out), b3=tile_bias(b3, d_out),
        d_in=d_in, d_out=d_out, group=group, pack=pack,
    )


@functools.partial(jax.jit,
                   static_argnames=("d_in", "d_out", "group", "pack", "max_tile_rows"))
def _forward_impl(x, w1, b1, w2, b2, w3, b3, *,
                  d_in, d_out, group, pack, max_tile_rows):
    B, D = x.shape
    assert D == d_in
    fin = pack * group       # packed input/hidden lane width (128 here)
    fout = pack * d_out      # packed logits lane width (32 here)

    # Row packing / tiling.  One fat grid step for small/medium batches
    # (grid=(1,)); large batches get big tiles so per-step overhead amortizes
    # and the "parallel" axis can shard across v7x's two TensorCores.
    rows_needed = -(-B // pack)                                  # ceil(B / pack)
    tile = min(_round_up(rows_needed, SUBLANE),
               _round_up(max_tile_rows, SUBLANE))
    rows = _round_up(rows_needed, tile)
    Bp = rows * pack
    grid = (rows // tile,)

    # Pack: pad batch (and per-row features if group > d_in), cast to bf16,
    # then a free contiguous reshape puts `pack` logical rows per physical row.
    xp = jnp.pad(x.astype(jnp.bfloat16), ((0, Bp - B), (0, group - d_in)))
    xp = xp.reshape(rows, fin)

    out_packed = pl.pallas_call(
        inference_kernel,
        out_shape=jax.ShapeDtypeStruct((rows, fout), jnp.float32),
        grid_spec=pltpu.PrefetchScalarGridSpec(
            num_scalar_prefetch=0,
            grid=grid,
            in_specs=[
                pl.BlockSpec((tile, fin), lambda i: (i, 0)),   # packed x tile (bf16)
                pl.BlockSpec((fin, fin), lambda i: (0, 0)),    # W1 block-diag (resident)
                pl.BlockSpec((1, fin), lambda i: (0, 0)),      # b1 tiled
                pl.BlockSpec((fin, fin), lambda i: (0, 0)),    # W2 block-diag
                pl.BlockSpec((1, fin), lambda i: (0, 0)),      # b2 tiled
                pl.BlockSpec((fin, fout), lambda i: (0, 0)),   # W3 block (128x32)
                pl.BlockSpec((1, fout), lambda i: (0, 0)),     # b3 tiled
            ],
            out_specs=pl.BlockSpec((tile, fout), lambda i: (i, 0)),  # packed logits
        ),
        compiler_params=pltpu.CompilerParams(
            dimension_semantics=("parallel",),
            vmem_limit_bytes=32 * 1024 * 1024,
        ),
    )(xp, w1, b1, w2, b2, w3, b3)

    # Unpack: free reshape back to (Bp, d_out), drop batch padding.
    return out_packed.reshape(Bp, d_out)[:B]


def inference_forward(x, pparams, max_tile_rows=1024):
    return _forward_impl(
        x,
        pparams["w1"], pparams["b1"],
        pparams["w2"], pparams["b2"],
        pparams["w3"], pparams["b3"],
        d_in=pparams["d_in"], d_out=pparams["d_out"],
        group=pparams["group"], pack=pparams["pack"],
        max_tile_rows=max_tile_rows,
    )


def reference_forward(x, params):
    """Precision-matched pure-JAX reference (bf16 storage, f32 accumulate/tanh)."""
    w1 = params["w1"].astype(jnp.bfloat16)
    w2 = params["w2"].astype(jnp.bfloat16)
    w3 = params["w3"].astype(jnp.bfloat16)
    h = jnp.dot(x.astype(jnp.bfloat16), w1, preferred_element_type=jnp.float32) + params["b1"]
    h = jnp.tanh(jnp.tanh(h))
    h = jnp.dot(h.astype(jnp.bfloat16), w2, preferred_element_type=jnp.float32) + params["b2"]
    h = jnp.tanh(h)
    return jnp.dot(h.astype(jnp.bfloat16), w3, preferred_element_type=jnp.float32) + params["b3"]


if __name__ == "__main__":
    # Module hyper-params: input=32, hidden=32, output=8 (K, alpha unused in forward).
    B, D_IN, HIDDEN, D_OUT = 256, 32, 32, 8
    key = jax.random.PRNGKey(0)
    kx, kp = jax.random.split(key)
    x = jax.random.normal(kx, (B, D_IN), jnp.float32)

    params = init_params(kp, D_IN, HIDDEN, D_OUT)
    pparams = prepare_params(params)

    out = inference_forward(x, pparams)
    out = jax.block_until_ready(out)

    ref = reference_forward(x, params)
    assert out.shape == (B, D_OUT)
    assert jnp.allclose(out, ref, atol=5e-3, rtol=0.0), float(jnp.max(jnp.abs(out - ref)))
    print("KERNEL_OK")
</pallas_src>

<mosaic_0001>
module attributes {stable_mosaic.version = 11 : i64} {
  func.func @inference_kernel(%arg0: i32, %arg1: memref<64x128xbf16, #tpu.memory_space<vmem>>, %arg2: memref<128x128xbf16, #tpu.memory_space<vmem>>, %arg3: memref<1x128xf32, #tpu.memory_space<vmem>>, %arg4: memref<128x128xbf16, #tpu.memory_space<vmem>>, %arg5: memref<1x128xf32, #tpu.memory_space<vmem>>, %arg6: memref<128x32xbf16, #tpu.memory_space<vmem>>, %arg7: memref<1x32xf32, #tpu.memory_space<vmem>>, %arg8: memref<64x32xf32, #tpu.memory_space<vmem>>) attributes {dimension_semantics = [#tpu.dimension_semantics<parallel>], iteration_bounds = array<i64: 1>, scalar_prefetch = 0 : i64, scratch_operands = 0 : i64, tpu.core_type = #tpu.core_type<tc>, window_params = [{transform_indices = @transform_0, window_bounds = array<i64: 64, 128>}, {pipeline_mode = #tpu.pipeline_mode<synchronous>, transform_indices = @transform_1, window_bounds = array<i64: 128, 128>}, {pipeline_mode = #tpu.pipeline_mode<synchronous>, transform_indices = @transform_2, window_bounds = array<i64: 1, 128>}, {pipeline_mode = #tpu.pipeline_mode<synchronous>, transform_indices = @transform_3, window_bounds = array<i64: 128, 128>}, {pipeline_mode = #tpu.pipeline_mode<synchronous>, transform_indices = @transform_4, window_bounds = array<i64: 1, 128>}, {pipeline_mode = #tpu.pipeline_mode<synchronous>, transform_indices = @transform_5, window_bounds = array<i64: 128, 32>}, {pipeline_mode = #tpu.pipeline_mode<synchronous>, transform_indices = @transform_6, window_bounds = array<i64: 1, 32>}, {transform_indices = @transform_7, window_bounds = array<i64: 64, 32>}]} {
    %c0 = arith.constant 0 : index
    %c0_0 = arith.constant 0 : index
    %0 = vector.load %arg1[%c0, %c0_0] : memref<64x128xbf16, #tpu.memory_space<vmem>>, vector<64x128xbf16>
    %c0_1 = arith.constant 0 : index
    %c0_2 = arith.constant 0 : index
    %1 = vector.load %arg2[%c0_1, %c0_2] : memref<128x128xbf16, #tpu.memory_space<vmem>>, vector<128x128xbf16>
    %cst = arith.constant dense<0.000000e+00> : vector<64x128xf32>
    %2 = tpu.matmul %0, %1, %cst {dimension_numbers = #tpu.dot_dimension_numbers<[1], [0], [0], [1], [0, 0, 1, 1], [], []>} : vector<64x128xbf16>, vector<128x128xbf16>, vector<64x128xf32> -> vector<64x128xf32>
    %c0_3 = arith.constant 0 : index
    %c0_4 = arith.constant 0 : index
    %3 = vector.load %arg3[%c0_3, %c0_4] : memref<1x128xf32, #tpu.memory_space<vmem>>, vector<1x128xf32>
    %4 = vector.broadcast %3 : vector<1x128xf32> to vector<64x128xf32>
    %5 = arith.addf %2, %4 : vector<64x128xf32>
    %6 = math.tanh %5 : vector<64x128xf32>
    %7 = math.tanh %6 : vector<64x128xf32>
    %8 = arith.truncf %7 : vector<64x128xf32> to vector<64x128xbf16>
    %c0_5 = arith.constant 0 : index
    %c0_6 = arith.constant 0 : index
    %9 = vector.load %arg4[%c0_5, %c0_6] : memref<128x128xbf16, #tpu.memory_space<vmem>>, vector<128x128xbf16>
    %cst_7 = arith.constant dense<0.000000e+00> : vector<64x128xf32>
    %10 = tpu.matmul %8, %9, %cst_7 {dimension_numbers = #tpu.dot_dimension_numbers<[1], [0], [0], [1], [0, 0, 1, 1], [], []>} : vector<64x128xbf16>, vector<128x128xbf16>, vector<64x128xf32> -> vector<64x128xf32>
    %c0_8 = arith.constant 0 : index
    %c0_9 = arith.constant 0 : index
    %11 = vector.load %arg5[%c0_8, %c0_9] : memref<1x128xf32, #tpu.memory_space<vmem>>, vector<1x128xf32>
    %12 = vector.broadcast %11 : vector<1x128xf32> to vector<64x128xf32>
    %13 = arith.addf %10, %12 : vector<64x128xf32>
    %14 = math.tanh %13 : vector<64x128xf32>
    %15 = arith.truncf %14 : vector<64x128xf32> to vector<64x128xbf16>
    %c0_10 = arith.constant 0 : index
    %c0_11 = arith.constant 0 : index
    %16 = vector.load %arg6[%c0_10, %c0_11] : memref<128x32xbf16, #tpu.memory_space<vmem>>, vector<128x32xbf16>
    %cst_12 = arith.constant dense<0.000000e+00> : vector<64x32xf32>
    %17 = tpu.matmul %15, %16, %cst_12 {dimension_numbers = #tpu.dot_dimension_numbers<[1], [0], [0], [1], [0, 0, 1, 1], [], []>} : vector<64x128xbf16>, vector<128x32xbf16>, vector<64x32xf32> -> vector<64x32xf32>
    %c0_13 = arith.constant 0 : index
    %c0_14 = arith.constant 0 : index
    %18 = vector.load %arg7[%c0_13, %c0_14] : memref<1x32xf32, #tpu.memory_space<vmem>>, vector<1x32xf32>
    %19 = vector.broadcast %18 : vector<1x32xf32> to vector<64x32xf32>
    %20 = arith.addf %17, %19 : vector<64x32xf32>
    %c0_15 = arith.constant 0 : index
    %c0_16 = arith.constant 0 : index
    %21 = vector.load %arg8[%c0_15, %c0_16] : memref<64x32xf32, #tpu.memory_space<vmem>>, vector<64x32xf32>
    tpu.vector_store %arg8[%c0_15, %c0_16], %20 {strides = array<i32>} : memref<64x32xf32, #tpu.memory_space<vmem>>, vector<64x32xf32>,
    return
  }
  func.func @transform_0(%arg0: i32) -> (i32, i32) {
    %c0_i32 = arith.constant 0 : i32
    %c0_i32_0 = arith.constant 0 : i32
    return %arg0, %c0_i32 : i32, i32
  }
  func.func @transform_1(%arg0: i32) -> (i32, i32) {
    %c0_i32 = arith.constant 0 : i32
    %c0_i32_0 = arith.constant 0 : i32
    %c0_i32_1 = arith.constant 0 : i32
    return %c0_i32, %c0_i32_0 : i32, i32
  }
  func.func @transform_2(%arg0: i32) -> (i32, i32) {
    %c0_i32 = arith.constant 0 : i32
    %c0_i32_0 = arith.constant 0 : i32
    %c0_i32_1 = arith.constant 0 : i32
    return %c0_i32, %c0_i32_0 : i32, i32
  }
  func.func @transform_3(%arg0: i32) -> (i32, i32) {
    %c0_i32 = arith.constant 0 : i32
    %c0_i32_0 = arith.constant 0 : i32
    %c0_i32_1 = arith.constant 0 : i32
    return %c0_i32, %c0_i32_0 : i32, i32
  }
  func.func @transform_4(%arg0: i32) -> (i32, i32) {
    %c0_i32 = arith.constant 0 : i32
    %c0_i32_0 = arith.constant 0 : i32
    %c0_i32_1 = arith.constant 0 : i32
    return %c0_i32, %c0_i32_0 : i32, i32
  }
  func.func @transform_5(%arg0: i32) -> (i32, i32) {
    %c0_i32 = arith.constant 0 : i32
    %c0_i32_0 = arith.constant 0 : i32
    %c0_i32_1 = arith.constant 0 : i32
    return %c0_i32, %c0_i32_0 : i32, i32
  }
  func.func @transform_6(%arg0: i32) -> (i32, i32) {
    %c0_i32 = arith.constant 0 : i32
    %c0_i32_0 = arith.constant 0 : i32
    %c0_i32_1 = arith.constant 0 : i32
    return %c0_i32, %c0_i32_0 : i32, i32
  }
  func.func @transform_7(%arg0: i32) -> (i32, i32) {
    %c0_i32 = arith.constant 0 : i32
    %c0_i32_0 = arith.constant 0 : i32
    return %arg0, %c0_i32 : i32, i32
  }
}

</mosaic_0001>

<bundles_post_ra>
// kernel: _forward_impl.1
= control target key start
LH: loop header
LB: loop body
LE: loop exit
PB: predicated region body
PF: predicated region fallthrough
CT: control target
= control target key end

     0   :  { %vm499_vm0 = vcmask 261120   ;;  %s908_s1 = inlined_call_operand.vmem [shape: bf16[128,128], index: 1, kind: input, shape index: {}]   ;;  %s909_s0 = inlined_call_operand.vmem [shape: bf16[64,128], index: 0, kind: input, shape index: {}]   ;;  %s910_s3 = inlined_call_operand.vmem [shape: bf16[128,128], index: 3, kind: input, shape index: {}]   ;;  %s911_s5 = inlined_call_operand.vmem [shape: bf16[128,32], index: 5, kind: input, shape index: {}]   ;;  %s912_s2 = inlined_call_operand.vmem [shape: f32[1,128], index: 2, kind: input, shape index: {}]   ;;  %s913_s4 = inlined_call_operand.vmem [shape: f32[1,128], index: 4, kind: input, shape index: {}]   ;;  %s914_s6 = inlined_call_operand.vmem [shape: f32[1,32], index: 6, kind: input, shape index: {}]   ;;  %s915_s7 = inlined_call_operand.vmem [shape: f32[64,32], index: 7, kind: output, shape index: {}]  }
   0x1   :  { %v667_v0 = vld [vmem:[%s908_s1 + $0x38] sm:$0xff]   ;;  %v668_v1 = vld [vmem:[%s908_s1 + $0x30] sm:$0xff]   ;;  %v669_v2 = vld [vmem:[%s908_s1 + $0x28] sm:$0xff]  }
   0x2   :  { %579 = vmatprep.subr.bf16.mxu0 %v667_v0  ;;  %v670_v3 = vld [vmem:[%s908_s1 + $0x20] sm:$0xff]   ;;  %v671_v5 = vld [vmem:[%s908_s1 + $0x18] sm:$0xff]   ;;  %v672_v6 = vld [vmem:[%s908_s1 + $0x10] sm:$0xff]  }
   0x3   :  { %580 = vmatpush3.bf16.msra.mxu0 %v667_v0  ;;  %v675_v4 = vld [vmem:[%s909_s0] sm:$0xff]   ;;  %v673_v7 = vld [vmem:[%s908_s1 + $0x8] sm:$0xff]   ;;  %v677_v10 = vld [vmem:[%s909_s0 + $0x10] sm:$0xff]  }
   0x4   :  { %581 = vmatprep.subr.bf16.mxu0 %v668_v1  ;;  %595 = vmatprep.mubr.bf16.mxu0 %v675_v4  ;;  %v674_v8 = vld [vmem:[%s908_s1] sm:$0xff]   ;;  %v676_v9 = vld [vmem:[%s909_s0 + $0x8] sm:$0xff]   ;;  %v678_v11 = vld [vmem:[%s909_s0 + $0x18] sm:$0xff]  }
   0x5   :  { %v679_v12 = vld [vmem:[%s910_s3 + $0x38] sm:$0xff]   ;;  %v680_v13 = vld [vmem:[%s910_s3 + $0x30] sm:$0xff]   ;;  %v681_v14 = vld [vmem:[%s910_s3 + $0x28] sm:$0xff]  }
   0x6   :  { %603 = vmatprep.subr.bf16.mxu1 %v679_v12  ;;  %v682_v15 = vld [vmem:[%s910_s3 + $0x20] sm:$0xff]   ;;  %v683_v16 = vld [vmem:[%s910_s3 + $0x18] sm:$0xff]   ;;  %v684_v17 = vld [vmem:[%s910_s3 + $0x10] sm:$0xff]  }
   0x7   :  { %582 = vmatpush3.bf16.msra.mxu0 %v668_v1  ;;  %604 = vmatpush3.bf16.msra.mxu1 %v679_v12  ;;  %v685_v18 = vld [vmem:[%s910_s3 + $0x8] sm:$0xff]   ;;  %v686_v19 = vld [vmem:[%s910_s3] sm:$0xff]   ;;  %v687_v20 = vld [vmem:[%s911_s5 + $0x38] sm:$0xff]  }
   0x8   :  { %583 = vmatprep.subr.bf16.mxu0 %v669_v2  ;;  %605 = vmatprep.subr.bf16.mxu1 %v680_v13  ;;  %v688_v21 = vld [vmem:[%s911_s5 + $0x30] sm:$0xff]   ;;  %v512_v23 = vld [vmem:[%s912_s2] ss:$0 sm:$0xff]  ;;  %v689_v59 = vld [vmem:[%s911_s5 + $0x28] sm:$0xff]  }
   0x9   :  { %v690_v60 = vld [vmem:[%s911_s5 + $0x20] sm:$0xff]   ;;  %v691_v61 = vld [vmem:[%s911_s5 + $0x18] sm:$0xff]   ;;  %v692_v62 = vld [vmem:[%s911_s5 + $0x10] sm:$0xff]  }
   0xa   :  { %v693_v63 = vld [vmem:[%s911_s5 + $0x8] sm:$0xff]   ;;  %v694_v0 = vld [vmem:[%s911_s5] sm:$0xff]  }
   0xb   :  { %584 = vmatpush3.bf16.msra.mxu0 %v669_v2  ;;  %606 = vmatpush3.bf16.msra.mxu1 %v680_v13  ;;  %v525_v2 = vld [vmem:[%s913_s4] ss:$0 sm:$0xff] }
   0xc   :  { %585 = vmatprep.subr.bf16.mxu0 %v670_v3  ;;  %607 = vmatprep.subr.bf16.mxu1 %v681_v14 }
   0xf   :  { %586 = vmatpush3.bf16.msra.mxu0 %v670_v3  ;;  %608 = vmatpush3.bf16.msra.mxu1 %v681_v14 }
  0x10   :  { %587 = vmatprep.subr.bf16.mxu0 %v671_v5  ;;  %609 = vmatprep.subr.bf16.mxu1 %v682_v15 }
  0x13   :  { %588 = vmatpush3.bf16.msra.mxu0 %v671_v5  ;;  %610 = vmatpush3.bf16.msra.mxu1 %v682_v15 }
  0x14   :  { %589 = vmatprep.subr.bf16.mxu0 %v672_v6  ;;  %611 = vmatprep.subr.bf16.mxu1 %v683_v16 }
  0x17   :  { %590 = vmatpush3.bf16.msra.mxu0 %v672_v6  ;;  %612 = vmatpush3.bf16.msra.mxu1 %v683_v16 }
  0x18   :  { %591 = vmatprep.subr.bf16.mxu0 %v673_v7  ;;  %613 = vmatprep.subr.bf16.mxu1 %v684_v17 }
  0x1b   :  { %592 = vmatpush3.bf16.msra.mxu0 %v673_v7  ;;  %614 = vmatpush3.bf16.msra.mxu1 %v684_v17 }
  0x1c   :  { %593 = vmatprep.subr.bf16.mxu0 %v674_v8  ;;  %615 = vmatprep.subr.bf16.mxu1 %v685_v18 }
  0x1f   :  { %594 = vmatpush3.bf16.msra.mxu0 %v674_v8  ;;  %616 = vmatpush3.bf16.msra.mxu1 %v685_v18 }
  0x20   :  { %617 = vmatprep.subr.bf16.mxu1 %v686_v19  ;;  %627 = vmatprep.subr.bf16.mxu0 %v687_v20 }
  0x22   :  { %596 = vmatmul.mubr.bf16.vlgmr.msra.gmra.mxu0 %v676_v9 }
  0x23   :  { %599 = vmatprep.mubr.bf16.mxu0 %v677_v10  ;;  %618 = vmatpush3.bf16.msra.mxu1 %v686_v19 }
  0x24   :  { %651 = vmatprep.subr.bf16.mxu1 %v687_v20  ;;  %628 = vmatpush3.bf16.msra.mxu0 %v687_v20 }
  0x25   :  { %629 = vmatprep.subr.bf16.mxu0 %v688_v21 }
  0x28   :  { %630 = vmatpush3.bf16.msra.mxu0 %v688_v21 }
  0x29   :  { %631 = vmatprep.subr.bf16.mxu0 %v689_v59 }
  0x2a   :  { %600 = vmatmul.mubr.bf16.gmra.mxu0 %v678_v11 }
  0x2c   :  { %632 = vmatpush3.bf16.msra.mxu0 %v689_v59 }
  0x2d   :  { %633 = vmatprep.subr.bf16.mxu0 %v690_v60 }
  0x30   :  { %634 = vmatpush3.bf16.msra.mxu0 %v690_v60 }
  0x31   :  { %635 = vmatprep.subr.bf16.mxu0 %v691_v61 }
  0x34   :  { %636 = vmatpush3.bf16.msra.mxu0 %v691_v61 }
  0x35   :  { %637 = vmatprep.subr.bf16.mxu0 %v692_v62 }
  0x38   :  { %638 = vmatpush3.bf16.msra.mxu0 %v692_v62 }
  0x39   :  { %639 = vmatprep.subr.bf16.mxu0 %v693_v63 }
  0x3c   :  { %640 = vmatpush3.bf16.msra.mxu0 %v693_v63 }
  0x3d   :  { %641 = vmatprep.subr.bf16.mxu0 %v694_v0 }
  0x40   :  { %642 = vmatpush3.bf16.msra.mxu0 %v694_v0 }
  0xe2   :  { %v597_v22 = vpop.f32.mrf.mxu0 }
  0xe3   :  { %v173_v26 = vadd.f32 %v597_v22, %v512_v23 }
  0xe4   :  { %v164_v24 = vpop.f32.mrf.mxu0 }
  0xe5   :  { %v165_v25 = vadd.f32 %v512_v23, %v164_v24 }
  0xe6   :  { %v598_v27 = vpop.f32.mrf.mxu0 }
  0xe7   :  { %695 = vtanh.f32 %v165_v25  ;;  %v176_v28 = vadd.f32 %v598_v27, %v512_v23 }
  0xe8   :  { %v167_v29 = vpop.f32.mrf.mxu0 }
  0xe9   :  { %697 = vtanh.f32 %v176_v28  ;;  %v168_v30 = vadd.f32 %v512_v23, %v167_v29 }
  0xea   :  { %699 = vtanh.f32 %v173_v26  ;;  %v601_v31 = vpop.f32.mrf.mxu0 }
  0xeb   :  { %701 = vtanh.f32 %v168_v30  ;;  %v189_v35 = vadd.f32 %v601_v31, %v512_v23  ;;  %v534_v30 = vld [vmem:[%s914_s6] ss:$0 sm:$0xff] }
  0xec   :  { %v180_v32 = vpop.f32.mrf.mxu0 }
  0xed   :  { %v181_v33 = vadd.f32 %v512_v23, %v180_v32 }
  0xee   :  { %v602_v34 = vpop.f32.mrf.mxu0 }
  0xef   :  { %v192_v36 = vadd.f32 %v602_v34, %v512_v23  ;;  %703 = vtanh.f32 %v181_v33 }
  0xf0   :  { %v183_v37 = vpop.f32.mrf.mxu0 }
  0xf1   :  { %705 = vtanh.f32 %v192_v36  ;;  %v184_v38 = vadd.f32 %v512_v23, %v183_v37 }
  0xf2   :  { %707 = vtanh.f32 %v189_v35 }
  0xf3   :  { %709 = vtanh.f32 %v184_v38 }
  0xf4   :  { %v696_v39 = vpop.eup %695 }
  0xf5   :  { %711 = vtanh.f32 %v696_v39 }
  0xf6   :  { %v698_v40 = vpop.eup %697 }
  0xf7   :  { %v700_v41 = vpop.eup %699  ;;  %713 = vtanh.f32 %v698_v40 }
  0xf8   :  { %v702_v42 = vpop.eup %701 }
  0xf9   :  { %715 = vtanh.f32 %v702_v42 }
  0xfa   :  { %717 = vtanh.f32 %v700_v41 }
  0xfc   :  { %v704_v43 = vpop.eup %703 }
  0xfd   :  { %719 = vtanh.f32 %v704_v43 }
  0xfe   :  { %v706_v44 = vpop.eup %705 }
  0xff   :  { %v708_v45 = vpop.eup %707  ;;  %721 = vtanh.f32 %v706_v44 }
 0x100   :  { %v710_v46 = vpop.eup %709 }
 0x101   :  { %723 = vtanh.f32 %v710_v46 }
 0x102   :  { %725 = vtanh.f32 %v708_v45  ;;  %v712_v47 = vpop.eup %711 }
 0x104   :  { %v714_v48 = vpop.eup %713 }
 0x106   :  { %v716_v49 = vpop.eup %715 }
 0x107   :  { %v718_v50 = vpop.eup %717  ;;  %v211_v51 = vpack.c.bf16 %v716_v49, %v712_v47 }
 0x108   :  { %v212_v52 = vpack.c.bf16 %v714_v48, %v718_v50 }
 0x109   :  { %619 = vmatprep.mubr.bf16.mxu1 %v211_v51 }
 0x10a   :  { %620 = vmatmul.mubr.bf16.vlgmr.msra.gmra.mxu1 %v212_v52  ;;  %v720_v53 = vpop.eup %719 }
 0x10b   :  { %659 = vmatpush3.bf16.msra.mxu1 %v687_v20 }
 0x10c   :  { %652 = vmatprep.subr.bf16.mxu1 %v688_v21  ;;  %v722_v54 = vpop.eup %721 }
 0x10e   :  { %v724_v55 = vpop.eup %723 }
 0x10f   :  { %660 = vmatpush3.bf16.msra.mxu1 %v688_v21  ;;  %v726_v56 = vpop.eup %725  ;;  %v213_v57 = vpack.c.bf16 %v724_v55, %v720_v53 }
 0x110   :  { %v214_v58 = vpack.c.bf16 %v722_v54, %v726_v56  ;;  %653 = vmatprep.subr.bf16.mxu1 %v689_v59 }
 0x111   :  { %623 = vmatprep.mubr.bf16.mxu1 %v213_v57 }
 0x112   :  { %624 = vmatmul.mubr.bf16.gmra.mxu1 %v214_v58 }
 0x113   :  { %661 = vmatpush3.bf16.msra.mxu1 %v689_v59 }
 0x114   :  { %654 = vmatprep.subr.bf16.mxu1 %v690_v60 }
 0x117   :  { %662 = vmatpush3.bf16.msra.mxu1 %v690_v60 }
 0x118   :  { %655 = vmatprep.subr.bf16.mxu1 %v691_v61 }
 0x11b   :  { %663 = vmatpush3.bf16.msra.mxu1 %v691_v61 }
 0x11c   :  { %656 = vmatprep.subr.bf16.mxu1 %v692_v62 }
 0x11f   :  { %664 = vmatpush3.bf16.msra.mxu1 %v692_v62 }
 0x120   :  { %657 = vmatprep.subr.bf16.mxu1 %v693_v63 }
 0x123   :  { %665 = vmatpush3.bf16.msra.mxu1 %v693_v63 }
 0x124   :  { %658 = vmatprep.subr.bf16.mxu1 %v694_v0 }
 0x127   :  { %666 = vmatpush3.bf16.msra.mxu1 %v694_v0 }
 0x1ca   :  { %v621_v1 = vpop.f32.mrf.mxu1 }
 0x1cb   :  { %v329_v7 = vadd.f32 %v621_v1, %v525_v2 }
 0x1cc   :  { %v320_v3 = vpop.f32.mrf.mxu1 }
 0x1cd   :  { %v321_v4 = vadd.f32 %v525_v2, %v320_v3 }
 0x1ce   :  { %v622_v5 = vpop.f32.mrf.mxu1 }
 0x1cf   :  { %v332_v6 = vadd.f32 %v622_v5, %v525_v2  ;;  %727 = vtanh.f32 %v321_v4 }
 0x1d0   :  { %v323_v8 = vpop.f32.mrf.mxu1 }
 0x1d1   :  { %v324_v9 = vadd.f32 %v525_v2, %v323_v8  ;;  %729 = vtanh.f32 %v332_v6 }
 0x1d2   :  { %v625_v10 = vpop.f32.mrf.mxu1 }
 0x1d3   :  { %731 = vtanh.f32 %v324_v9  ;;  %v345_v15 = vadd.f32 %v625_v10, %v525_v2 }
 0x1d4   :  { %733 = vtanh.f32 %v329_v7  ;;  %v336_v11 = vpop.f32.mrf.mxu1 }
 0x1d5   :  { %v337_v12 = vadd.f32 %v525_v2, %v336_v11 }
 0x1d6   :  { %v626_v13 = vpop.f32.mrf.mxu1 }
 0x1d7   :  { %v348_v14 = vadd.f32 %v626_v13, %v525_v2  ;;  %735 = vtanh.f32 %v337_v12 }
 0x1d8   :  { %v339_v16 = vpop.f32.mrf.mxu1 }
 0x1d9   :  { %v340_v17 = vadd.f32 %v525_v2, %v339_v16  ;;  %737 = vtanh.f32 %v348_v14 }
 0x1db   :  { %739 = vtanh.f32 %v340_v17 }
 0x1dc   :  { %741 = vtanh.f32 %v345_v15  ;;  %v728_v18 = vpop.eup %727 }
 0x1de   :  { %v730_v19 = vpop.eup %729 }
 0x1e0   :  { %v732_v20 = vpop.eup %731 }
 0x1e1   :  { %v734_v21 = vpop.eup %733  ;;  %v359_v22 = vpack.c.bf16 %v732_v20, %v728_v18 }
 0x1e2   :  { %v360_v23 = vpack.c.bf16 %v730_v19, %v734_v21 }
 0x1e3   :  { %643 = vmatprep.mubr.bf16.mxu0 %v359_v22 }
 0x1e4   :  { %644 = vmatmul.mubr.bf16.vlgmr.msra.gmra.mxu0 %v360_v23  ;;  %v736_v24 = vpop.eup %735 }
 0x1e6   :  { %v738_v25 = vpop.eup %737 }
 0x1e8   :  { %v740_v26 = vpop.eup %739 }
 0x1e9   :  { %v742_v27 = vpop.eup %741  ;;  %v361_v28 = vpack.c.bf16 %v740_v26, %v736_v24 }
 0x1ea   :  { %v362_v29 = vpack.c.bf16 %v738_v25, %v742_v27 }
 0x1eb   :  { %647 = vmatprep.mubr.bf16.mxu1 %v361_v28 }
 0x1ec   :  { %648 = vmatmul.mubr.bf16.vlgmr.msra.gmra.mxu1 %v362_v29 }
 0x2a4   :  { %v645_v31 = vpop.f32.mrf.mxu0 }
 0x2a5   :  { %v477_v32 = vadd.f32 %v645_v31, %v534_v30 }
 0x2a6   :  { %v468_v33 = vpop.f32.mrf.mxu0 }
 0x2a7   :  { %502 = vst.msk [vmem:[%s915_s7 + $0x10] sm:$0xff] %vm499_vm0, %v477_v32  ;;  %v469_v34 = vadd.f32 %v534_v30, %v468_v33 }
 0x2a8   :  { %v646_v35 = vpop.f32.mrf.mxu0 }
 0x2a9   :  { %500 = vst.msk [vmem:[%s915_s7] sm:$0xff] %vm499_vm0, %v469_v34  ;;  %v480_v36 = vadd.f32 %v646_v35, %v534_v30 }
 0x2aa   :  { %v471_v37 = vpop.f32.mrf.mxu0 }
 0x2ab   :  { %503 = vst.msk [vmem:[%s915_s7 + $0x18] sm:$0xff] %vm499_vm0, %v480_v36  ;;  %v472_v38 = vadd.f32 %v534_v30, %v471_v37 }
 0x2ac   :  { %v649_v39 = vpop.f32.mrf.mxu1 }
 0x2ad   :  { %501 = vst.msk [vmem:[%s915_s7 + $0x8] sm:$0xff] %vm499_vm0, %v472_v38  ;;  %v493_v40 = vadd.f32 %v649_v39, %v534_v30 }
 0x2ae   :  { %v484_v41 = vpop.f32.mrf.mxu1 }
 0x2af   :  { %506 = vst.msk [vmem:[%s915_s7 + $0x30] sm:$0xff] %vm499_vm0, %v493_v40  ;;  %v485_v42 = vadd.f32 %v534_v30, %v484_v41 }
 0x2b0   :  { %v650_v43 = vpop.f32.mrf.mxu1 }
 0x2b1   :  { %504 = vst.msk [vmem:[%s915_s7 + $0x20] sm:$0xff] %vm499_vm0, %v485_v42  ;;  %v496_v44 = vadd.f32 %v650_v43, %v534_v30 }
 0x2b2   :  { %v487_v45 = vpop.f32.mrf.mxu1 }
 0x2b3   :  { %507 = vst.msk [vmem:[%s915_s7 + $0x38] sm:$0xff] %vm499_vm0, %v496_v44  ;;  %v488_v46 = vadd.f32 %v534_v30, %v487_v45 }
 0x2b5   :  { %505 = vst.msk [vmem:[%s915_s7 + $0x28] sm:$0xff] %vm499_vm0, %v488_v46 }

</bundles_post_ra>
